<compile_context>
chip_gen: v6e
topology: v6e:2x2x1
jax: 0.10.0
libtpu: 0.0.40
codegen_flags: <defaults>
</compile_context>

<pallas_src>
import functools
import math

import jax
import jax.numpy as jnp
from jax.experimental import pallas as pl
from jax.experimental.pallas import tpu as pltpu

LANE = 128
M_TILE_CAP = 256                      # keeps activation block bounded (v7x: 64 MiB VMEM)
VMEM_LIMIT = 32 * 1024 * 1024         # <= physical on v5e/v6e/v7x, >= all defaults


def _round_up(x, m):
    return (x + m - 1) // m * m


# ---------------------------------------------------------------------------
# Pallas kernels
# ---------------------------------------------------------------------------
def _mm_bias_act_kernel(a_ref, b_ref, bias_ref, o_ref, *, relu):
    acc = jnp.dot(a_ref[...], b_ref[...], preferred_element_type=jnp.float32)
    acc = acc + bias_ref[...]                     # (1, tn) broadcasts over (tm, tn)
    if relu:
        acc = jnp.maximum(acc, 0.0)
    o_ref[...] = acc.astype(o_ref.dtype)


def _mlp_head_kernel(x_ref, w1_ref, b1_ref, w2_ref, b2_ref, o_ref):
    # Fused Linear(512) + ReLU + Linear(out); hidden activation stays in VMEM.
    h = jnp.dot(x_ref[...], w1_ref[...], preferred_element_type=jnp.float32)
    h = jnp.maximum(h + b1_ref[...], 0.0)
    out = jnp.dot(h.astype(w2_ref.dtype), w2_ref[...],
                  preferred_element_type=jnp.float32)
    o_ref[...] = (out + b2_ref[...]).astype(o_ref.dtype)


# ---------------------------------------------------------------------------
# Wrappers
# ---------------------------------------------------------------------------
def _m_tiling(m):
    mp = _round_up(m, 16)             # bf16 sublane packing
    if mp <= M_TILE_CAP:
        return mp, mp
    mp = _round_up(m, M_TILE_CAP)
    return mp, M_TILE_CAP


def matmul_bias_act(a, w_p, bias_p, *, relu, out_dtype):
    """a: [M, Kp] bf16 (K pre-padded to match w_p); w_p: [Kp, Np] bf16;
    bias_p: [1, Np] f32 -> [Mp, Np] out_dtype (rows beyond M are junk)."""
    m, k = a.shape
    kp, np_ = w_p.shape
    assert k == kp, (k, kp)
    mp, tm = _m_tiling(m)
    tn = 256 if np_ % 256 == 0 else LANE          # v6e/v7x like 256-wide N tiles
    if mp != m:
        a = jnp.pad(a, ((0, mp - m), (0, 0)))
    grid = (mp // tm, np_ // tn)
    cost = pl.CostEstimate(
        flops=2 * mp * kp * np_, transcendentals=0,
        bytes_accessed=(mp * kp + kp * np_) * 2 + np_ * 4 + mp * np_ * 4)
    return pl.pallas_call(
        functools.partial(_mm_bias_act_kernel, relu=relu),
        out_shape=jax.ShapeDtypeStruct((mp, np_), out_dtype),
        grid=grid,
        in_specs=[
            pl.BlockSpec((tm, kp), lambda i, j: (i, 0)),
            pl.BlockSpec((kp, tn), lambda i, j: (0, j)),
            pl.BlockSpec((1, tn), lambda i, j: (0, j)),
        ],
        out_specs=pl.BlockSpec((tm, tn), lambda i, j: (i, j)),
        compiler_params=pltpu.CompilerParams(
            dimension_semantics=("parallel", "parallel"),
            vmem_limit_bytes=VMEM_LIMIT),
        cost_estimate=cost,
    )(a, w_p, bias_p)


def mlp_head(flat, w1_p, b1_p, w2_p, b2_p):
    """Fused relu(flat @ w1 + b1) @ w2 + b2 in one pallas_call."""
    m, k1 = flat.shape
    k1p, n1 = w1_p.shape
    n1b, n2 = w2_p.shape
    assert k1 == k1p and n1 == n1b, (k1, k1p, n1, n1b)
    mp, tm = _m_tiling(m)
    if mp != m:
        flat = jnp.pad(flat, ((0, mp - m), (0, 0)))
    cost = pl.CostEstimate(
        flops=2 * mp * (k1p * n1 + n1 * n2), transcendentals=0,
        bytes_accessed=(mp * k1p + k1p * n1 + n1 * n2) * 2
        + (n1 + n2) * 4 + mp * n2 * 4)
    return pl.pallas_call(
        _mlp_head_kernel,
        out_shape=jax.ShapeDtypeStruct((mp, n2), jnp.float32),
        grid=(mp // tm,),
        in_specs=[
            pl.BlockSpec((tm, k1p), lambda i: (i, 0)),
            pl.BlockSpec((k1p, n1), lambda i: (0, 0)),
            pl.BlockSpec((1, n1), lambda i: (0, 0)),
            pl.BlockSpec((n1, n2), lambda i: (0, 0)),
            pl.BlockSpec((1, n2), lambda i: (0, 0)),
        ],
        out_specs=pl.BlockSpec((tm, n2), lambda i: (i, 0)),
        compiler_params=pltpu.CompilerParams(
            dimension_semantics=("parallel",),
            vmem_limit_bytes=VMEM_LIMIT),
        cost_estimate=cost,
    )(flat, w1_p, b1_p, w2_p, b2_p)


# ---------------------------------------------------------------------------
# Conv via NHWC strided-slice im2col + Pallas matmul
# ---------------------------------------------------------------------------
def _im2col_nhwc(x, k, s, k_pad_to):
    """x: [B, H, W, C] -> patches [B*H1*W1, k_pad_to] in (kh, kw, C) order.
    Uses k*k static strided slices (no gathers / 6-D transposes)."""
    b, h, w, c = x.shape
    h1 = (h - k) // s + 1
    w1 = (w - k) // s + 1
    pieces = []
    for di in range(k):
        for dj in range(k):
            pieces.append(jax.lax.slice(
                x, (0, di, dj, 0),
                (b, di + (h1 - 1) * s + 1, dj + (w1 - 1) * s + 1, c),
                (1, s, s, 1)))
    patches = jnp.concatenate(pieces, axis=-1)          # [B, H1, W1, k*k*C]
    kk = k * k * c
    if k_pad_to > kk:
        patches = jnp.pad(patches, ((0, 0), (0, 0), (0, 0), (0, k_pad_to - kk)))
    return patches.reshape(b * h1 * w1, k_pad_to), h1, w1
# TODO(synk): patch extraction could move fully in-kernel (pl.ds strided reads
# per output tile) to also drop the im2col materialization; kept in XLA for now.


def conv2d_bias_relu(x, w_p, b_p, *, k, stride, oc=None):
    """x: [B, H, W, Cin] bf16 NHWC; w_p: [Kp, OCp] bf16 (prepared); b_p: [1, OCp].
    Returns NHWC bf16 output; channels sliced to `oc` if given, else kept padded
    (padded channels are exactly zero)."""
    b = x.shape[0]
    kp, ocp = w_p.shape
    patches, h1, w1 = _im2col_nhwc(x, k, stride, kp)
    m = b * h1 * w1
    out = matmul_bias_act(patches, w_p, b_p, relu=True, out_dtype=jnp.bfloat16)
    if out.shape[0] != m:
        out = out[:m]
    out = out.reshape(b, h1, w1, ocp)
    if oc is not None and oc != ocp:
        out = out[..., :oc]
    return out


# ---------------------------------------------------------------------------
# Parameters (PyTorch layout) + one-time prep
# ---------------------------------------------------------------------------
def _conv_out(n, k, s):
    return (n - k) // s + 1


def init_params(key, input_shape, output_dim):
    c, h, w = input_shape
    h1, w1 = _conv_out(h, 8, 4), _conv_out(w, 8, 4)
    h2, w2 = _conv_out(h1, 4, 2), _conv_out(w1, 4, 2)
    h3, w3 = _conv_out(h2, 3, 1), _conv_out(w2, 3, 1)
    n_flatten = 64 * h3 * w3
    ks = jax.random.split(key, 10)

    def uinit(k_, shape, fan_in):
        bound = 1.0 / math.sqrt(fan_in)
        return jax.random.uniform(k_, shape, jnp.float32, -bound, bound)

    return {
        "w1": uinit(ks[0], (32, c, 8, 8), c * 64),
        "b1": uinit(ks[1], (32,), c * 64),
        "w2": uinit(ks[2], (64, 32, 4, 4), 32 * 16),
        "b2": uinit(ks[3], (64,), 32 * 16),
        "w3": uinit(ks[4], (64, 64, 3, 3), 64 * 9),
        "b3": uinit(ks[5], (64,), 64 * 9),
        "wl1": uinit(ks[6], (512, n_flatten), n_flatten),   # PyTorch [out, in]
        "bl1": uinit(ks[7], (512,), n_flatten),
        "wl2": uinit(ks[8], (output_dim, 512), 512),
        "bl2": uinit(ks[9], (output_dim,), 512),
    }


def prepare_params(params, input_shape):
    """One-time prep: OIHW -> (kh,kw,Cin)xOC matrices, pad K/N to tile multiples,
    permute wl1 rows to the NHWC / channel-padded flatten order, cast matmul
    operands to bf16. Done once, outside the per-step forward."""
    c, h, w = input_shape
    h1, w1 = _conv_out(h, 8, 4), _conv_out(w, 8, 4)
    h2, w2 = _conv_out(h1, 4, 2), _conv_out(w1, 4, 2)
    h3, w3 = _conv_out(h2, 3, 1), _conv_out(w2, 3, 1)

    def conv_weight(wt):
        oc, ci, kh, kw = wt.shape
        kdim = kh * kw * ci
        mat = wt.transpose(2, 3, 1, 0).reshape(kdim, oc)     # (kh,kw,Cin) x OC
        kp, ocp = _round_up(kdim, LANE), _round_up(oc, LANE)
        return jnp.pad(mat, ((0, kp - kdim), (0, ocp - oc))).astype(jnp.bfloat16)

    def bias_row(bv, np_):
        return jnp.pad(bv, (0, np_ - bv.shape[0])).reshape(1, np_).astype(jnp.float32)

    w1p, w2p, w3p = (conv_weight(params[k]) for k in ("w1", "w2", "w3"))
    oc3p = w3p.shape[1]                                      # conv3 padded channels

    # wl1 columns permuted from NCHW flatten -> (h, w, c_padded) NHWC flatten.
    wl1 = params["wl1"].reshape(512, 64, h3, w3).transpose(0, 2, 3, 1)
    wl1 = jnp.pad(wl1, ((0, 0), (0, 0), (0, 0), (0, oc3p - 64)))
    wl1 = wl1.reshape(512, h3 * w3 * oc3p).T                 # [K1p, 512]

    out_dim = params["wl2"].shape[0]
    n2p = _round_up(out_dim, LANE)
    wl2 = jnp.pad(params["wl2"].T, ((0, 0), (0, n2p - out_dim)))

    return {
        "w1": w1p, "b1": bias_row(params["b1"], w1p.shape[1]),
        "w2": w2p, "b2": bias_row(params["b2"], w2p.shape[1]),
        "w3": w3p, "b3": bias_row(params["b3"], w3p.shape[1]),
        "wl1": wl1.astype(jnp.bfloat16),
        "bl1": params["bl1"].reshape(1, 512).astype(jnp.float32),
        "wl2": wl2.astype(jnp.bfloat16),
        "bl2": bias_row(params["bl2"], n2p),
    }


# ---------------------------------------------------------------------------
# Forward
# ---------------------------------------------------------------------------
def nature_cnn_forward(x_nchw, prep, *, output_dim):
    """x: [B, C, H, W] f32 (PyTorch layout) -> [B, output_dim] f32."""
    x = jnp.transpose(x_nchw, (0, 2, 3, 1)).astype(jnp.bfloat16)   # NHWC, once
    x = conv2d_bias_relu(x, prep["w1"], prep["b1"], k=8, stride=4, oc=32)
    x = conv2d_bias_relu(x, prep["w2"], prep["b2"], k=4, stride=2, oc=64)
    x = conv2d_bias_relu(x, prep["w3"], prep["b3"], k=3, stride=1, oc=None)
    b = x.shape[0]
    flat = x.reshape(b, -1)          # (h, w, c_padded) order == prep["wl1"] rows
    out = mlp_head(flat, prep["wl1"], prep["bl1"], prep["wl2"], prep["bl2"])
    return out[:b, :output_dim]


# ---------------------------------------------------------------------------
# Pure-JAX f32 reference for validation
# ---------------------------------------------------------------------------
def reference_forward(x, params):
    def conv(x, w, b, s):
        y = jax.lax.conv_general_dilated(
            x, w, (s, s), "VALID", dimension_numbers=("NCHW", "OIHW", "NCHW"))
        return jax.nn.relu(y + b[None, :, None, None])

    x = conv(x, params["w1"], params["b1"], 4)
    x = conv(x, params["w2"], params["b2"], 2)
    x = conv(x, params["w3"], params["b3"], 1)
    flat = x.reshape(x.shape[0], -1)
    h = jax.nn.relu(flat @ params["wl1"].T + params["bl1"])
    return h @ params["wl2"].T + params["bl2"]


if __name__ == "__main__":
    # conv pipeline: 36 -> 8 -> 3 -> 1  => n_flatten = 64
    input_shape = (4, 36, 36)
    output_dim = 32
    batch = 2

    key = jax.random.PRNGKey(0)
    k_params, k_x = jax.random.split(key)
    params = init_params(k_params, input_shape, output_dim)
    prep = prepare_params(params, input_shape)           # one-time weight prep
    x = jax.random.normal(k_x, (batch,) + input_shape, dtype=jnp.float32)

    fwd = jax.jit(functools.partial(nature_cnn_forward, output_dim=output_dim))
    out = jax.block_until_ready(fwd(x, prep))

    ref = jax.block_until_ready(reference_forward(x, params))
    assert out.shape == (batch, output_dim), out.shape
    # bf16 MXU operands (f32 accumulation) vs. a pure-f32 reference.
    max_err = float(jnp.max(jnp.abs(out - ref)))
    assert jnp.allclose(out, ref, rtol=5e-2, atol=5e-2), max_err

    print("KERNEL_OK")
</pallas_src>

<mosaic_0001>
module attributes {stable_mosaic.version = 11 : i64} {
  func.func @_mm_bias_act_kernel(%arg0: i32, %arg1: i32, %arg2: memref<128x256xbf16, #tpu.memory_space<vmem>>, %arg3: memref<256x128xbf16, #tpu.memory_space<vmem>>, %arg4: memref<1x128xf32, #tpu.memory_space<vmem>>, %arg5: memref<128x128xbf16, #tpu.memory_space<vmem>>) attributes {dimension_semantics = [#tpu.dimension_semantics<parallel>, #tpu.dimension_semantics<parallel>], iteration_bounds = array<i64: 1, 1>, scalar_prefetch = 0 : i64, scratch_operands = 0 : i64, tpu.core_type = #tpu.core_type<tc>, window_params = [{transform_indices = @transform_0, window_bounds = array<i64: 128, 256>}, {transform_indices = @transform_1, window_bounds = array<i64: 256, 128>}, {transform_indices = @transform_2, window_bounds = array<i64: 1, 128>}, {transform_indices = @transform_3, window_bounds = array<i64: 128, 128>}]} {
    %c0 = arith.constant 0 : index
    %c0_0 = arith.constant 0 : index
    %0 = vector.load %arg2[%c0, %c0_0] : memref<128x256xbf16, #tpu.memory_space<vmem>>, vector<128x256xbf16>
    %c0_1 = arith.constant 0 : index
    %c0_2 = arith.constant 0 : index
    %1 = vector.load %arg3[%c0_1, %c0_2] : memref<256x128xbf16, #tpu.memory_space<vmem>>, vector<256x128xbf16>
    %cst = arith.constant dense<0.000000e+00> : vector<128x128xf32>
    %2 = tpu.matmul %0, %1, %cst {dimension_numbers = #tpu.dot_dimension_numbers<[1], [0], [0], [1], [0, 0, 1, 1], [], []>} : vector<128x256xbf16>, vector<256x128xbf16>, vector<128x128xf32> -> vector<128x128xf32>
    %c0_3 = arith.constant 0 : index
    %c0_4 = arith.constant 0 : index
    %3 = vector.load %arg4[%c0_3, %c0_4] : memref<1x128xf32, #tpu.memory_space<vmem>>, vector<1x128xf32>
    %4 = vector.broadcast %3 : vector<1x128xf32> to vector<128x128xf32>
    %5 = arith.addf %2, %4 : vector<128x128xf32>
    %cst_5 = arith.constant 0.000000e+00 : f32
    %6 = vector.broadcast %cst_5 : f32 to vector<128x128xf32>
    %7 = arith.maximumf %5, %6 : vector<128x128xf32>
    %8 = arith.truncf %7 : vector<128x128xf32> to vector<128x128xbf16>
    %c0_6 = arith.constant 0 : index
    %c0_7 = arith.constant 0 : index
    %9 = vector.load %arg5[%c0_6, %c0_7] : memref<128x128xbf16, #tpu.memory_space<vmem>>, vector<128x128xbf16>
    tpu.vector_store %arg5[%c0_6, %c0_7], %8 {strides = array<i32>} : memref<128x128xbf16, #tpu.memory_space<vmem>>, vector<128x128xbf16>,
    return
  }
  func.func @transform_0(%arg0: i32, %arg1: i32) -> (i32, i32) {
    %c0_i32 = arith.constant 0 : i32
    %c0_i32_0 = arith.constant 0 : i32
    return %arg0, %c0_i32 : i32, i32
  }
  func.func @transform_1(%arg0: i32, %arg1: i32) -> (i32, i32) {
    %c0_i32 = arith.constant 0 : i32
    %c0_i32_0 = arith.constant 0 : i32
    return %c0_i32, %arg1 : i32, i32
  }
  func.func @transform_2(%arg0: i32, %arg1: i32) -> (i32, i32) {
    %c0_i32 = arith.constant 0 : i32
    %c0_i32_0 = arith.constant 0 : i32
    return %c0_i32, %arg1 : i32, i32
  }
  func.func @transform_3(%arg0: i32, %arg1: i32) -> (i32, i32) {
    %c0_i32 = arith.constant 0 : i32
    return %arg0, %arg1 : i32, i32
  }
}

module attributes {stable_mosaic.version = 11 : i64} {
  func.func @_mm_bias_act_kernel(%arg0: i32, %arg1: i32, %arg2: memref<32x512xbf16, #tpu.memory_space<vmem>>, %arg3: memref<512x128xbf16, #tpu.memory_space<vmem>>, %arg4: memref<1x128xf32, #tpu.memory_space<vmem>>, %arg5: memref<32x128xbf16, #tpu.memory_space<vmem>>) attributes {dimension_semantics = [#tpu.dimension_semantics<parallel>, #tpu.dimension_semantics<parallel>], iteration_bounds = array<i64: 1, 1>, scalar_prefetch = 0 : i64, scratch_operands = 0 : i64, tpu.core_type = #tpu.core_type<tc>, window_params = [{transform_indices = @transform_0, window_bounds = array<i64: 32, 512>}, {transform_indices = @transform_1, window_bounds = array<i64: 512, 128>}, {transform_indices = @transform_2, window_bounds = array<i64: 1, 128>}, {transform_indices = @transform_3, window_bounds = array<i64: 32, 128>}]} {
    %c0 = arith.constant 0 : index
    %c0_0 = arith.constant 0 : index
    %0 = vector.load %arg2[%c0, %c0_0] : memref<32x512xbf16, #tpu.memory_space<vmem>>, vector<32x512xbf16>
    %c0_1 = arith.constant 0 : index
    %c0_2 = arith.constant 0 : index
    %1 = vector.load %arg3[%c0_1, %c0_2] : memref<512x128xbf16, #tpu.memory_space<vmem>>, vector<512x128xbf16>
    %cst = arith.constant dense<0.000000e+00> : vector<32x128xf32>
    %2 = tpu.matmul %0, %1, %cst {dimension_numbers = #tpu.dot_dimension_numbers<[1], [0], [0], [1], [0, 0, 1, 1], [], []>} : vector<32x512xbf16>, vector<512x128xbf16>, vector<32x128xf32> -> vector<32x128xf32>
    %c0_3 = arith.constant 0 : index
    %c0_4 = arith.constant 0 : index
    %3 = vector.load %arg4[%c0_3, %c0_4] : memref<1x128xf32, #tpu.memory_space<vmem>>, vector<1x128xf32>
    %4 = vector.broadcast %3 : vector<1x128xf32> to vector<32x128xf32>
    %5 = arith.addf %2, %4 : vector<32x128xf32>
    %cst_5 = arith.constant 0.000000e+00 : f32
    %6 = vector.broadcast %cst_5 : f32 to vector<32x128xf32>
    %7 = arith.maximumf %5, %6 : vector<32x128xf32>
    %8 = arith.truncf %7 : vector<32x128xf32> to vector<32x128xbf16>
    %c0_6 = arith.constant 0 : index
    %c0_7 = arith.constant 0 : index
    %9 = vector.load %arg5[%c0_6, %c0_7] : memref<32x128xbf16, #tpu.memory_space<vmem>>, vector<32x128xbf16>
    tpu.vector_store %arg5[%c0_6, %c0_7], %8 {strides = array<i32>} : memref<32x128xbf16, #tpu.memory_space<vmem>>, vector<32x128xbf16>,
    return
  }
  func.func @transform_0(%arg0: i32, %arg1: i32) -> (i32, i32) {
    %c0_i32 = arith.constant 0 : i32
    %c0_i32_0 = arith.constant 0 : i32
    return %arg0, %c0_i32 : i32, i32
  }
  func.func @transform_1(%arg0: i32, %arg1: i32) -> (i32, i32) {
    %c0_i32 = arith.constant 0 : i32
    %c0_i32_0 = arith.constant 0 : i32
    return %c0_i32, %arg1 : i32, i32
  }
  func.func @transform_2(%arg0: i32, %arg1: i32) -> (i32, i32) {
    %c0_i32 = arith.constant 0 : i32
    %c0_i32_0 = arith.constant 0 : i32
    return %c0_i32, %arg1 : i32, i32
  }
  func.func @transform_3(%arg0: i32, %arg1: i32) -> (i32, i32) {
    %c0_i32 = arith.constant 0 : i32
    return %arg0, %arg1 : i32, i32
  }
}

module attributes {stable_mosaic.version = 11 : i64} {
  func.func @_mm_bias_act_kernel(%arg0: i32, %arg1: i32, %arg2: memref<16x640xbf16, #tpu.memory_space<vmem>>, %arg3: memref<640x128xbf16, #tpu.memory_space<vmem>>, %arg4: memref<1x128xf32, #tpu.memory_space<vmem>>, %arg5: memref<16x128xbf16, #tpu.memory_space<vmem>>) attributes {dimension_semantics = [#tpu.dimension_semantics<parallel>, #tpu.dimension_semantics<parallel>], iteration_bounds = array<i64: 1, 1>, scalar_prefetch = 0 : i64, scratch_operands = 0 : i64, tpu.core_type = #tpu.core_type<tc>, window_params = [{transform_indices = @transform_0, window_bounds = array<i64: 16, 640>}, {transform_indices = @transform_1, window_bounds = array<i64: 640, 128>}, {transform_indices = @transform_2, window_bounds = array<i64: 1, 128>}, {transform_indices = @transform_3, window_bounds = array<i64: 16, 128>}]} {
    %c0 = arith.constant 0 : index
    %c0_0 = arith.constant 0 : index
    %0 = vector.load %arg2[%c0, %c0_0] : memref<16x640xbf16, #tpu.memory_space<vmem>>, vector<16x640xbf16>
    %c0_1 = arith.constant 0 : index
    %c0_2 = arith.constant 0 : index
    %1 = vector.load %arg3[%c0_1, %c0_2] : memref<640x128xbf16, #tpu.memory_space<vmem>>, vector<640x128xbf16>
    %cst = arith.constant dense<0.000000e+00> : vector<16x128xf32>
    %2 = tpu.matmul %0, %1, %cst {dimension_numbers = #tpu.dot_dimension_numbers<[1], [0], [0], [1], [0, 0, 1, 1], [], []>} : vector<16x640xbf16>, vector<640x128xbf16>, vector<16x128xf32> -> vector<16x128xf32>
    %c0_3 = arith.constant 0 : index
    %c0_4 = arith.constant 0 : index
    %3 = vector.load %arg4[%c0_3, %c0_4] : memref<1x128xf32, #tpu.memory_space<vmem>>, vector<1x128xf32>
    %4 = vector.broadcast %3 : vector<1x128xf32> to vector<16x128xf32>
    %5 = arith.addf %2, %4 : vector<16x128xf32>
    %cst_5 = arith.constant 0.000000e+00 : f32
    %6 = vector.broadcast %cst_5 : f32 to vector<16x128xf32>
    %7 = arith.maximumf %5, %6 : vector<16x128xf32>
    %8 = arith.truncf %7 : vector<16x128xf32> to vector<16x128xbf16>
    %c0_6 = arith.constant 0 : index
    %c0_7 = arith.constant 0 : index
    %9 = vector.load %arg5[%c0_6, %c0_7] : memref<16x128xbf16, #tpu.memory_space<vmem>>, vector<16x128xbf16>
    tpu.vector_store %arg5[%c0_6, %c0_7], %8 {strides = array<i32>} : memref<16x128xbf16, #tpu.memory_space<vmem>>, vector<16x128xbf16>,
    return
  }
  func.func @transform_0(%arg0: i32, %arg1: i32) -> (i32, i32) {
    %c0_i32 = arith.constant 0 : i32
    %c0_i32_0 = arith.constant 0 : i32
    return %arg0, %c0_i32 : i32, i32
  }
  func.func @transform_1(%arg0: i32, %arg1: i32) -> (i32, i32) {
    %c0_i32 = arith.constant 0 : i32
    %c0_i32_0 = arith.constant 0 : i32
    return %c0_i32, %arg1 : i32, i32
  }
  func.func @transform_2(%arg0: i32, %arg1: i32) -> (i32, i32) {
    %c0_i32 = arith.constant 0 : i32
    %c0_i32_0 = arith.constant 0 : i32
    return %c0_i32, %arg1 : i32, i32
  }
  func.func @transform_3(%arg0: i32, %arg1: i32) -> (i32, i32) {
    %c0_i32 = arith.constant 0 : i32
    return %arg0, %arg1 : i32, i32
  }
}

module attributes {stable_mosaic.version = 11 : i64} {
  func.func @_mlp_head_kernel(%arg0: i32, %arg1: memref<16x128xbf16, #tpu.memory_space<vmem>>, %arg2: memref<128x512xbf16, #tpu.memory_space<vmem>>, %arg3: memref<1x512xf32, #tpu.memory_space<vmem>>, %arg4: memref<512x128xbf16, #tpu.memory_space<vmem>>, %arg5: memref<1x128xf32, #tpu.memory_space<vmem>>, %arg6: memref<16x128xf32, #tpu.memory_space<vmem>>) attributes {dimension_semantics = [#tpu.dimension_semantics<parallel>], iteration_bounds = array<i64: 1>, scalar_prefetch = 0 : i64, scratch_operands = 0 : i64, tpu.core_type = #tpu.core_type<tc>, window_params = [{transform_indices = @transform_0, window_bounds = array<i64: 16, 128>}, {pipeline_mode = #tpu.pipeline_mode<synchronous>, transform_indices = @transform_1, window_bounds = array<i64: 128, 512>}, {pipeline_mode = #tpu.pipeline_mode<synchronous>, transform_indices = @transform_2, window_bounds = array<i64: 1, 512>}, {pipeline_mode = #tpu.pipeline_mode<synchronous>, transform_indices = @transform_3, window_bounds = array<i64: 512, 128>}, {pipeline_mode = #tpu.pipeline_mode<synchronous>, transform_indices = @transform_4, window_bounds = array<i64: 1, 128>}, {transform_indices = @transform_5, window_bounds = array<i64: 16, 128>}]} {
    %c0 = arith.constant 0 : index
    %c0_0 = arith.constant 0 : index
    %0 = vector.load %arg1[%c0, %c0_0] : memref<16x128xbf16, #tpu.memory_space<vmem>>, vector<16x128xbf16>
    %c0_1 = arith.constant 0 : index
    %c0_2 = arith.constant 0 : index
    %1 = vector.load %arg2[%c0_1, %c0_2] : memref<128x512xbf16, #tpu.memory_space<vmem>>, vector<128x512xbf16>
    %cst = arith.constant dense<0.000000e+00> : vector<16x512xf32>
    %2 = tpu.matmul %0, %1, %cst {dimension_numbers = #tpu.dot_dimension_numbers<[1], [0], [0], [1], [0, 0, 1, 1], [], []>} : vector<16x128xbf16>, vector<128x512xbf16>, vector<16x512xf32> -> vector<16x512xf32>
    %c0_3 = arith.constant 0 : index
    %c0_4 = arith.constant 0 : index
    %3 = vector.load %arg3[%c0_3, %c0_4] : memref<1x512xf32, #tpu.memory_space<vmem>>, vector<1x512xf32>
    %4 = vector.broadcast %3 : vector<1x512xf32> to vector<16x512xf32>
    %5 = arith.addf %2, %4 : vector<16x512xf32>
    %cst_5 = arith.constant 0.000000e+00 : f32
    %6 = vector.broadcast %cst_5 : f32 to vector<16x512xf32>
    %7 = arith.maximumf %5, %6 : vector<16x512xf32>
    %8 = arith.truncf %7 : vector<16x512xf32> to vector<16x512xbf16>
    %c0_6 = arith.constant 0 : index
    %c0_7 = arith.constant 0 : index
    %9 = vector.load %arg4[%c0_6, %c0_7] : memref<512x128xbf16, #tpu.memory_space<vmem>>, vector<512x128xbf16>
    %cst_8 = arith.constant dense<0.000000e+00> : vector<16x128xf32>
    %10 = tpu.matmul %8, %9, %cst_8 {dimension_numbers = #tpu.dot_dimension_numbers<[1], [0], [0], [1], [0, 0, 1, 1], [], []>} : vector<16x512xbf16>, vector<512x128xbf16>, vector<16x128xf32> -> vector<16x128xf32>
    %c0_9 = arith.constant 0 : index
    %c0_10 = arith.constant 0 : index
    %11 = vector.load %arg5[%c0_9, %c0_10] : memref<1x128xf32, #tpu.memory_space<vmem>>, vector<1x128xf32>
    %12 = vector.broadcast %11 : vector<1x128xf32> to vector<16x128xf32>
    %13 = arith.addf %10, %12 : vector<16x128xf32>
    %c0_11 = arith.constant 0 : index
    %c0_12 = arith.constant 0 : index
    %14 = vector.load %arg6[%c0_11, %c0_12] : memref<16x128xf32, #tpu.memory_space<vmem>>, vector<16x128xf32>
    tpu.vector_store %arg6[%c0_11, %c0_12], %13 {strides = array<i32>} : memref<16x128xf32, #tpu.memory_space<vmem>>, vector<16x128xf32>,
    return
  }
  func.func @transform_0(%arg0: i32) -> (i32, i32) {
    %c0_i32 = arith.constant 0 : i32
    %c0_i32_0 = arith.constant 0 : i32
    return %arg0, %c0_i32 : i32, i32
  }
  func.func @transform_1(%arg0: i32) -> (i32, i32) {
    %c0_i32 = arith.constant 0 : i32
    %c0_i32_0 = arith.constant 0 : i32
    %c0_i32_1 = arith.constant 0 : i32
    return %c0_i32, %c0_i32_0 : i32, i32
  }
  func.func @transform_2(%arg0: i32) -> (i32, i32) {
    %c0_i32 = arith.constant 0 : i32
    %c0_i32_0 = arith.constant 0 : i32
    %c0_i32_1 = arith.constant 0 : i32
    return %c0_i32, %c0_i32_0 : i32, i32
  }
  func.func @transform_3(%arg0: i32) -> (i32, i32) {
    %c0_i32 = arith.constant 0 : i32
    %c0_i32_0 = arith.constant 0 : i32
    %c0_i32_1 = arith.constant 0 : i32
    return %c0_i32, %c0_i32_0 : i32, i32
  }
  func.func @transform_4(%arg0: i32) -> (i32, i32) {
    %c0_i32 = arith.constant 0 : i32
    %c0_i32_0 = arith.constant 0 : i32
    %c0_i32_1 = arith.constant 0 : i32
    return %c0_i32, %c0_i32_0 : i32, i32
  }
  func.func @transform_5(%arg0: i32) -> (i32, i32) {
    %c0_i32 = arith.constant 0 : i32
    %c0_i32_0 = arith.constant 0 : i32
    return %arg0, %c0_i32 : i32, i32
  }
}

</mosaic_0001>

<bundles_post_ra>
// kernel: nature_cnn_forward.4
= control target key start
LH: loop header
LB: loop body
LE: loop exit
PB: predicated region body
PF: predicated region fallthrough
CT: control target
= control target key end

     0   :  { %s836_s1 = inlined_call_operand.vmem [shape: bf16[256,128], index: 1, kind: input, shape index: {}]   ;;  %s837_s0 = inlined_call_operand.vmem [shape: bf16[128,256], index: 0, kind: input, shape index: {}]   ;;  %s838_s2 = inlined_call_operand.vmem [shape: f32[1,128], index: 2, kind: input, shape index: {}]   ;;  %s839_s3 = inlined_call_operand.vmem [shape: bf16[128,128], index: 3, kind: output, shape index: {}]  }
   0x1   :  { %v635_v0 = vld [vmem:[%s836_s1 + $0x78] sm:$0xff]   ;;  %v637_v2 = vld [vmem:[%s836_s1 + $0x70] sm:$0xff]   ;;  %v639_v4 = vld [vmem:[%s836_s1 + $0x68] sm:$0xff]  }
   0x2   :  { %v636_v1 = vld [vmem:[%s836_s1 + $0x38] sm:$0xff]   ;;  %555 = vmatprep.subr.bf16.mxu0 %v635_v0  ;;  %619 = vmatprep.subr.bf16.mxu1 %v635_v0  ;;  %v638_v3 = vld [vmem:[%s836_s1 + $0x30] sm:$0xff]   ;;  %v640_v5 = vld [vmem:[%s836_s1 + $0x28] sm:$0xff]  }
   0x3   :  { %556 = vmatpush3.bf16.msra.mxu0 %v636_v1  ;;  %627 = vmatpush3.bf16.msra.mxu1 %v636_v1  ;;  %v641_v6 = vld [vmem:[%s836_s1 + $0x60] sm:$0xff]   ;;  %v643_v8 = vld [vmem:[%s836_s1 + $0x58] sm:$0xff]   ;;  %v645_v10 = vld [vmem:[%s836_s1 + $0x50] sm:$0xff]  }
   0x4   :  { %557 = vmatprep.subr.bf16.mxu0 %v637_v2  ;;  %620 = vmatprep.subr.bf16.mxu1 %v637_v2  ;;  %v642_v7 = vld [vmem:[%s836_s1 + $0x20] sm:$0xff]   ;;  %v644_v9 = vld [vmem:[%s836_s1 + $0x18] sm:$0xff]   ;;  %v646_v13 = vld [vmem:[%s836_s1 + $0x10] sm:$0xff]  }
   0x5   :  { %v653_v11 = vld [vmem:[%s837_s0 + $0x4] ss:$8 sps:$4 sm:$0xff]   ;;  %v651_v18 = vld [vmem:[%s837_s0] ss:$8 sps:$4 sm:$0xff]   ;;  %v657_v20 = vld [vmem:[%s837_s0 + $0x14] ss:$8 sps:$4 sm:$0xff]  }
   0x6   :  { %v656_v12 = vld [vmem:[%s837_s0 + $0x44] ss:$8 sps:$4 sm:$0xff]   ;;  %278 = vmatprep.mubr.bf16.mxu0 %v653_v11  ;;  %v654_v19 = vld [vmem:[%s837_s0 + $0x40] ss:$8 sps:$4 sm:$0xff]   ;;  %v659_v21 = vld [vmem:[%s837_s0 + $0x54] ss:$8 sps:$4 sm:$0xff]  }
   0x7   :  { %558 = vmatpush3.bf16.msra.mxu0 %v638_v3  ;;  %628 = vmatpush3.bf16.msra.mxu1 %v638_v3  ;;  %v647_v14 = vld [vmem:[%s836_s1 + $0x48] sm:$0xff]   ;;  %v649_v16 = vld [vmem:[%s836_s1 + $0x40] sm:$0xff]   ;;  %v661_v22 = vld [vmem:[%s837_s0 + $0x10] ss:$8 sps:$4 sm:$0xff]  }
   0x8   :  { %559 = vmatprep.subr.bf16.mxu0 %v639_v4  ;;  %621 = vmatprep.subr.bf16.mxu1 %v639_v4  ;;  %v648_v15 = vld [vmem:[%s836_s1 + $0x8] sm:$0xff]   ;;  %v650_v17 = vld [vmem:[%s836_s1] sm:$0xff]   ;;  %v662_v23 = vld [vmem:[%s837_s0 + $0x50] ss:$8 sps:$4 sm:$0xff]  }
   0x9   :  { %310 = vmatprep.mubr.bf16.mxu1 %v656_v12  ;;  %v663_v24 = vld [vmem:[%s837_s0 + $0x24] ss:$8 sps:$4 sm:$0xff]   ;;  %v667_v26 = vld [vmem:[%s837_s0 + $0x20] ss:$8 sps:$4 sm:$0xff]   ;;  %v669_v28 = vld [vmem:[%s837_s0 + $0x34] ss:$8 sps:$4 sm:$0xff]  }
   0xa   :  { %v665_v25 = vld [vmem:[%s837_s0 + $0x64] ss:$8 sps:$4 sm:$0xff]   ;;  %v668_v27 = vld [vmem:[%s837_s0 + $0x60] ss:$8 sps:$4 sm:$0xff]   ;;  %v671_v29 = vld [vmem:[%s837_s0 + $0x74] ss:$8 sps:$4 sm:$0xff]  }
   0xb   :  { %560 = vmatpush3.bf16.msra.mxu0 %v640_v5  ;;  %629 = vmatpush3.bf16.msra.mxu1 %v640_v5  ;;  %v673_v30 = vld [vmem:[%s837_s0 + $0x30] ss:$8 sps:$4 sm:$0xff]   ;;  %v794_v36 = vld [vmem:[%s838_s2] ss:$0 sm:$0xff] }
   0xc   :  { %561 = vmatprep.subr.bf16.mxu0 %v641_v6  ;;  %622 = vmatprep.subr.bf16.mxu1 %v641_v6  ;;  %v674_v31 = vld [vmem:[%s837_s0 + $0x70] ss:$8 sps:$4 sm:$0xff]  }
   0xf   :  { %562 = vmatpush3.bf16.msra.mxu0 %v642_v7  ;;  %630 = vmatpush3.bf16.msra.mxu1 %v642_v7 }
  0x10   :  { %563 = vmatprep.subr.bf16.mxu0 %v643_v8  ;;  %623 = vmatprep.subr.bf16.mxu1 %v643_v8 }
  0x13   :  { %564 = vmatpush3.bf16.msra.mxu0 %v644_v9  ;;  %631 = vmatpush3.bf16.msra.mxu1 %v644_v9 }
  0x14   :  { %565 = vmatprep.subr.bf16.mxu0 %v645_v10  ;;  %624 = vmatprep.subr.bf16.mxu1 %v645_v10 }
  0x17   :  { %566 = vmatpush3.bf16.msra.mxu0 %v646_v13  ;;  %632 = vmatpush3.bf16.msra.mxu1 %v646_v13 }
  0x18   :  { %567 = vmatprep.subr.bf16.mxu0 %v647_v14  ;;  %625 = vmatprep.subr.bf16.mxu1 %v647_v14 }
  0x1b   :  { %568 = vmatpush3.bf16.msra.mxu0 %v648_v15  ;;  %633 = vmatpush3.bf16.msra.mxu1 %v648_v15 }
  0x1c   :  { %569 = vmatprep.subr.bf16.mxu0 %v649_v16  ;;  %626 = vmatprep.subr.bf16.mxu1 %v649_v16 }
  0x1f   :  { %570 = vmatpush3.bf16.msra.mxu0 %v650_v17  ;;  %634 = vmatpush3.bf16.msra.mxu1 %v650_v17 }
  0x22   :  { %279 = vmatmul.mubr.bf16.vlgmr.msra.gmra.mxu0 %v651_v18  ;;  %311 = vmatmul.mubr.bf16.vlgmr.msra.gmra.mxu1 %v654_v19 }
  0x23   :  { %286 = vmatprep.mubr.bf16.mxu0 %v657_v20  ;;  %318 = vmatprep.mubr.bf16.mxu1 %v659_v21 }
  0x2a   :  { %287 = vmatmul.mubr.bf16.gmra.mxu0 %v661_v22  ;;  %319 = vmatmul.mubr.bf16.gmra.mxu1 %v662_v23 }
  0x2b   :  { %294 = vmatprep.mubr.bf16.mxu0 %v663_v24  ;;  %326 = vmatprep.mubr.bf16.mxu1 %v665_v25 }
  0x32   :  { %295 = vmatmul.mubr.bf16.gmra.mxu0 %v667_v26  ;;  %327 = vmatmul.mubr.bf16.gmra.mxu1 %v668_v27 }
  0x33   :  { %302 = vmatprep.mubr.bf16.mxu0 %v669_v28  ;;  %334 = vmatprep.mubr.bf16.mxu1 %v671_v29 }
  0x3a   :  { %303 = vmatmul.mubr.bf16.gmra.mxu0 %v673_v30  ;;  %335 = vmatmul.mubr.bf16.gmra.mxu1 %v674_v31 }
  0xe2   :  { %v571_v32 = vpop.f32.mrf.mxu0  ;;  %v595_v33 = vpop.f32.mrf.mxu1 }
  0xe4   :  { %v572_v34 = vpop.f32.mrf.mxu0  ;;  %v596_v35 = vpop.f32.mrf.mxu1 }
  0xe5   :  { %v573_v37 = vadd.f32 %v572_v34, %v571_v32  ;;  %v597_v38 = vadd.f32 %v596_v35, %v595_v33 }
  0xe6   :  { %v574_v39 = vpop.f32.mrf.mxu0  ;;  %v598_v40 = vpop.f32.mrf.mxu1 }
  0xe7   :  { %v281_v41 = vadd.f32 %v573_v37, %v794_v36  ;;  %v313_v42 = vadd.f32 %v597_v38, %v794_v36 }
  0xe8   :  { %v575_v43 = vpop.f32.mrf.mxu0  ;;  %v599_v44 = vpop.f32.mrf.mxu1 }
  0xe9   :  { %v576_v45 = vadd.f32 %v575_v43, %v574_v39  ;;  %v600_v46 = vadd.f32 %v599_v44, %v598_v40  ;;  %v343_v51 = vmax.f32 %v281_v41, 0.0  ;;  %v351_v52 = vmax.f32 %v313_v42, 0.0 }
  0xea   :  { %v577_v47 = vpop.f32.mrf.mxu0  ;;  %v601_v48 = vpop.f32.mrf.mxu1 }
  0xeb   :  { %v284_v49 = vadd.f32 %v576_v45, %v794_v36  ;;  %v316_v50 = vadd.f32 %v600_v46, %v794_v36 }
  0xec   :  { %v578_v53 = vpop.f32.mrf.mxu0  ;;  %v602_v54 = vpop.f32.mrf.mxu1 }
  0xed   :  { %v344_v55 = vmax.f32 %v284_v49, 0.0  ;;  %v352_v56 = vmax.f32 %v316_v50, 0.0  ;;  %v579_v57 = vadd.f32 %v578_v53, %v577_v47  ;;  %v603_v58 = vadd.f32 %v602_v54, %v601_v48 }
  0xee   :  { %v580_v59 = vpop.f32.mrf.mxu0  ;;  %v604_v60 = vpop.f32.mrf.mxu1 }
  0xef   :  { %v511_v61 = vpack.c.bf16 %v344_v55, %v343_v51  ;;  %v531_v62 = vpack.c.bf16 %v352_v56, %v351_v52  ;;  %v289_v63 = vadd.f32 %v579_v57, %v794_v36  ;;  %v321_v0 = vadd.f32 %v603_v58, %v794_v36 }
  0xf0   :  { %v581_v1 = vpop.f32.mrf.mxu0  ;;  %v605_v2 = vpop.f32.mrf.mxu1 }
  0xf1   :  { %512 = vst [vmem:[%s839_s3] sm:$0xff] %v511_v61   ;;  %551 = vst [vmem:[%s839_s3 + $0x20] sm:$0xff] %v531_v62   ;;  %v582_v3 = vadd.f32 %v581_v1, %v580_v59  ;;  %v606_v4 = vadd.f32 %v605_v2, %v604_v60  ;;  %v345_v9 = vmax.f32 %v289_v63, 0.0  ;;  %v353_v10 = vmax.f32 %v321_v0, 0.0 }
  0xf2   :  { %v583_v5 = vpop.f32.mrf.mxu0  ;;  %v607_v6 = vpop.f32.mrf.mxu1 }
  0xf3   :  { %v292_v7 = vadd.f32 %v582_v3, %v794_v36  ;;  %v324_v8 = vadd.f32 %v606_v4, %v794_v36 }
  0xf4   :  { %v584_v11 = vpop.f32.mrf.mxu0  ;;  %v608_v12 = vpop.f32.mrf.mxu1 }
  0xf5   :  { %v346_v13 = vmax.f32 %v292_v7, 0.0  ;;  %v354_v14 = vmax.f32 %v324_v8, 0.0  ;;  %v585_v15 = vadd.f32 %v584_v11, %v583_v5  ;;  %v609_v16 = vadd.f32 %v608_v12, %v607_v6 }
  0xf6   :  { %v586_v17 = vpop.f32.mrf.mxu0  ;;  %v610_v18 = vpop.f32.mrf.mxu1 }
  0xf7   :  { %v516_v19 = vpack.c.bf16 %v346_v13, %v345_v9  ;;  %v536_v20 = vpack.c.bf16 %v354_v14, %v353_v10  ;;  %v297_v21 = vadd.f32 %v585_v15, %v794_v36  ;;  %v329_v22 = vadd.f32 %v609_v16, %v794_v36 }
  0xf8   :  { %v587_v23 = vpop.f32.mrf.mxu0  ;;  %v611_v24 = vpop.f32.mrf.mxu1 }
  0xf9   :  { %548 = vst [vmem:[%s839_s3 + $0x8] sm:$0xff] %v516_v19   ;;  %552 = vst [vmem:[%s839_s3 + $0x28] sm:$0xff] %v536_v20   ;;  %v588_v25 = vadd.f32 %v587_v23, %v586_v17  ;;  %v612_v26 = vadd.f32 %v611_v24, %v610_v18  ;;  %v347_v31 = vmax.f32 %v297_v21, 0.0  ;;  %v355_v32 = vmax.f32 %v329_v22, 0.0 }
  0xfa   :  { %v589_v27 = vpop.f32.mrf.mxu0  ;;  %v613_v28 = vpop.f32.mrf.mxu1 }
  0xfb   :  { %v300_v29 = vadd.f32 %v588_v25, %v794_v36  ;;  %v332_v30 = vadd.f32 %v612_v26, %v794_v36 }
  0xfc   :  { %v590_v33 = vpop.f32.mrf.mxu0  ;;  %v614_v34 = vpop.f32.mrf.mxu1 }
  0xfd   :  { %v348_v35 = vmax.f32 %v300_v29, 0.0  ;;  %v356_v37 = vmax.f32 %v332_v30, 0.0  ;;  %v591_v38 = vadd.f32 %v590_v33, %v589_v27  ;;  %v615_v39 = vadd.f32 %v614_v34, %v613_v28 }
  0xfe   :  { %v592_v40 = vpop.f32.mrf.mxu0  ;;  %v616_v41 = vpop.f32.mrf.mxu1 }
  0xff   :  { %v521_v42 = vpack.c.bf16 %v348_v35, %v347_v31  ;;  %v541_v43 = vpack.c.bf16 %v356_v37, %v355_v32  ;;  %v305_v46 = vadd.f32 %v591_v38, %v794_v36  ;;  %v337_v47 = vadd.f32 %v615_v39, %v794_v36 }
 0x100   :  { %v593_v44 = vpop.f32.mrf.mxu0  ;;  %v617_v45 = vpop.f32.mrf.mxu1 }
 0x101   :  { %549 = vst [vmem:[%s839_s3 + $0x10] sm:$0xff] %v521_v42   ;;  %553 = vst [vmem:[%s839_s3 + $0x30] sm:$0xff] %v541_v43   ;;  %v594_v48 = vadd.f32 %v593_v44, %v592_v40  ;;  %v618_v49 = vadd.f32 %v617_v45, %v616_v41  ;;  %v349_v52 = vmax.f32 %v305_v46, 0.0  ;;  %v357_v53 = vmax.f32 %v337_v47, 0.0 }
 0x103   :  { %v308_v50 = vadd.f32 %v594_v48, %v794_v36  ;;  %v340_v51 = vadd.f32 %v618_v49, %v794_v36 }
 0x105   :  { %v350_v54 = vmax.f32 %v308_v50, 0.0  ;;  %v358_v55 = vmax.f32 %v340_v51, 0.0 }
 0x107   :  { %v526_v56 = vpack.c.bf16 %v350_v54, %v349_v52  ;;  %v546_v57 = vpack.c.bf16 %v358_v55, %v357_v53 }
 0x109   :  { %550 = vst [vmem:[%s839_s3 + $0x18] sm:$0xff] %v526_v56   ;;  %554 = vst [vmem:[%s839_s3 + $0x38] sm:$0xff] %v546_v57  }

// kernel: nature_cnn_forward.5
= control target key start
LH: loop header
LB: loop body
LE: loop exit
PB: predicated region body
PF: predicated region fallthrough
CT: control target
= control target key end

     0   :  { %s761_s1 = inlined_call_operand.vmem [shape: bf16[512,128], index: 1, kind: input, shape index: {}]   ;;  %s762_s0 = inlined_call_operand.vmem [shape: bf16[32,512], index: 0, kind: input, shape index: {}]   ;;  %s763_s2 = inlined_call_operand.vmem [shape: f32[1,128], index: 2, kind: input, shape index: {}]   ;;  %s764_s3 = inlined_call_operand.vmem [shape: bf16[32,128], index: 3, kind: output, shape index: {}]  }
   0x1   :  { %v568_v0 = vld [vmem:[%s761_s1 + $0x78] sm:$0xff]   ;;  %v572_v4 = vld [vmem:[%s761_s1 + $0x70] sm:$0xff]   ;;  %v576_v8 = vld [vmem:[%s761_s1 + $0x68] sm:$0xff]  }
   0x2   :  { %v569_v1 = vld [vmem:[%s761_s1 + $0xf8] sm:$0xff]   ;;  %512 = vmatprep.subr.bf16.mxu0 %v568_v0  ;;  %v573_v5 = vld [vmem:[%s761_s1 + $0xf0] sm:$0xff]   ;;  %v577_v9 = vld [vmem:[%s761_s1 + $0xe8] sm:$0xff]  }
   0x3   :  { %v570_v2 = vld [vmem:[%s761_s1 + $0x38] sm:$0xff]   ;;  %540 = vmatprep.subr.bf16.mxu1 %v569_v1  ;;  %v574_v6 = vld [vmem:[%s761_s1 + $0x30] sm:$0xff]   ;;  %v578_v10 = vld [vmem:[%s761_s1 + $0x28] sm:$0xff]  }
   0x4   :  { %v571_v3 = vld [vmem:[%s761_s1 + $0xb8] sm:$0xff]   ;;  %513 = vmatpush3.bf16.msra.mxu0 %v570_v2  ;;  %v575_v7 = vld [vmem:[%s761_s1 + $0xb0] sm:$0xff]   ;;  %v579_v11 = vld [vmem:[%s761_s1 + $0xa8] sm:$0xff]  }
   0x5   :  { %541 = vmatpush3.bf16.msra.mxu1 %v571_v3  ;;  %514 = vmatprep.subr.bf16.mxu0 %v572_v4  ;;  %v580_v12 = vld [vmem:[%s761_s1 + $0x60] sm:$0xff]   ;;  %v584_v16 = vld [vmem:[%s761_s1 + $0x58] sm:$0xff]   ;;  %v588_v20 = vld [vmem:[%s761_s1 + $0x50] sm:$0xff]  }
   0x6   :  { %542 = vmatprep.subr.bf16.mxu1 %v573_v5  ;;  %v581_v13 = vld [vmem:[%s761_s1 + $0xe0] sm:$0xff]   ;;  %v585_v17 = vld [vmem:[%s761_s1 + $0xd8] sm:$0xff]   ;;  %v589_v21 = vld [vmem:[%s761_s1 + $0xd0] sm:$0xff]  }
   0x7   :  { %v582_v14 = vld [vmem:[%s761_s1 + $0x20] sm:$0xff]   ;;  %v586_v18 = vld [vmem:[%s761_s1 + $0x18] sm:$0xff]   ;;  %v590_v22 = vld [vmem:[%s761_s1 + $0x10] sm:$0xff]  }
   0x8   :  { %515 = vmatpush3.bf16.msra.mxu0 %v574_v6  ;;  %v583_v15 = vld [vmem:[%s761_s1 + $0xa0] sm:$0xff]   ;;  %v587_v19 = vld [vmem:[%s761_s1 + $0x98] sm:$0xff]   ;;  %v591_v23 = vld [vmem:[%s761_s1 + $0x90] sm:$0xff]  }
   0x9   :  { %543 = vmatpush3.bf16.msra.mxu1 %v575_v7  ;;  %516 = vmatprep.subr.bf16.mxu0 %v576_v8  ;;  %v592_v24 = vld [vmem:[%s761_s1 + $0x48] sm:$0xff]   ;;  %v596_v28 = vld [vmem:[%s761_s1 + $0x40] sm:$0xff]  }
   0xa   :  { %544 = vmatprep.subr.bf16.mxu1 %v577_v9  ;;  %v593_v25 = vld [vmem:[%s761_s1 + $0xc8] sm:$0xff]   ;;  %v597_v29 = vld [vmem:[%s761_s1 + $0xc0] sm:$0xff]  }
   0xb   :  { %v594_v26 = vld [vmem:[%s761_s1 + $0x8] sm:$0xff]   ;;  %v598_v30 = vld [vmem:[%s761_s1] sm:$0xff]  }
   0xc   :  { %517 = vmatpush3.bf16.msra.mxu0 %v578_v10  ;;  %v595_v27 = vld [vmem:[%s761_s1 + $0x88] sm:$0xff]   ;;  %v599_v31 = vld [vmem:[%s761_s1 + $0x80] sm:$0xff]  }
   0xd   :  { %545 = vmatpush3.bf16.msra.mxu1 %v579_v11  ;;  %518 = vmatprep.subr.bf16.mxu0 %v580_v12  ;;  %v600_v32 = vld [vmem:[%s762_s0] ss:$16 sps:$4 sm:$0xff]   ;;  %v602_v33 = vld [vmem:[%s762_s0 + $0x4] ss:$16 sps:$4 sm:$0xff]   ;;  %v603_v34 = vld [vmem:[%s762_s0 + $0x8] ss:$16 sps:$4 sm:$0xff]  }
   0xe   :  { %546 = vmatprep.subr.bf16.mxu1 %v581_v13  ;;  %v605_v35 = vld [vmem:[%s762_s0 + $0xc] ss:$16 sps:$4 sm:$0xff]   ;;  %358 = vmatprep.mubr.bf16.mxu0 %v602_v33  ;;  %v606_v36 = vld [vmem:[%s762_s0 + $0x24] ss:$16 sps:$4 sm:$0xff]   ;;  %v610_v38 = vld [vmem:[%s762_s0 + $0x20] ss:$16 sps:$4 sm:$0xff]  }
   0xf   :  { %407 = vmatprep.mubr.bf16.mxu1 %v605_v35  ;;  %v608_v37 = vld [vmem:[%s762_s0 + $0x2c] ss:$16 sps:$4 sm:$0xff]   ;;  %v611_v39 = vld [vmem:[%s762_s0 + $0x28] ss:$16 sps:$4 sm:$0xff]   ;;  %v452_v42 = vld [vmem:[%s763_s2] ss:$0 sm:$0xff] }
  0x10   :  { %519 = vmatpush3.bf16.msra.mxu0 %v582_v14 }
  0x11   :  { %547 = vmatpush3.bf16.msra.mxu1 %v583_v15  ;;  %520 = vmatprep.subr.bf16.mxu0 %v584_v16 }
  0x12   :  { %548 = vmatprep.subr.bf16.mxu1 %v585_v17 }
  0x14   :  { %521 = vmatpush3.bf16.msra.mxu0 %v586_v18 }
  0x15   :  { %549 = vmatpush3.bf16.msra.mxu1 %v587_v19  ;;  %522 = vmatprep.subr.bf16.mxu0 %v588_v20 }
  0x16   :  { %550 = vmatprep.subr.bf16.mxu1 %v589_v21 }
  0x18   :  { %523 = vmatpush3.bf16.msra.mxu0 %v590_v22 }
  0x19   :  { %551 = vmatpush3.bf16.msra.mxu1 %v591_v23  ;;  %524 = vmatprep.subr.bf16.mxu0 %v592_v24 }
  0x1a   :  { %552 = vmatprep.subr.bf16.mxu1 %v593_v25 }
  0x1c   :  { %525 = vmatpush3.bf16.msra.mxu0 %v594_v26 }
  0x1d   :  { %553 = vmatpush3.bf16.msra.mxu1 %v595_v27  ;;  %526 = vmatprep.subr.bf16.mxu0 %v596_v28 }
  0x1e   :  { %554 = vmatprep.subr.bf16.mxu1 %v597_v29 }
  0x20   :  { %527 = vmatpush3.bf16.msra.mxu0 %v598_v30 }
  0x21   :  { %555 = vmatpush3.bf16.msra.mxu1 %v599_v31 }
  0x23   :  { %359 = vmatmul.mubr.bf16.vlgmr.msra.gmra.mxu0 %v600_v32 }
  0x24   :  { %408 = vmatmul.mubr.bf16.vlgmr.msra.gmra.mxu1 %v603_v34  ;;  %366 = vmatprep.mubr.bf16.mxu0 %v606_v36 }
  0x25   :  { %415 = vmatprep.mubr.bf16.mxu1 %v608_v37 }
  0x2b   :  { %367 = vmatmul.mubr.bf16.gmra.mxu0 %v610_v38 }
  0x2c   :  { %416 = vmatmul.mubr.bf16.gmra.mxu1 %v611_v39 }
  0xe3   :  { %v528_v40 = vpop.f32.mrf.mxu0 }
  0xe4   :  { %v556_v41 = vpop.f32.mrf.mxu1 }
  0xe5   :  { %v529_v43 = vpop.f32.mrf.mxu0 }
  0xe6   :  { %v530_v44 = vadd.f32 %v529_v43, %v528_v40  ;;  %v557_v45 = vpop.f32.mrf.mxu1 }
  0xe7   :  { %v531_v46 = vpop.f32.mrf.mxu0  ;;  %v558_v50 = vadd.f32 %v557_v45, %v556_v41 }
  0xe8   :  { %v361_v47 = vadd.f32 %v530_v44, %v452_v42  ;;  %v559_v48 = vpop.f32.mrf.mxu1 }
  0xe9   :  { %v532_v49 = vpop.f32.mrf.mxu0 }
  0xea   :  { %v533_v51 = vadd.f32 %v532_v49, %v531_v46  ;;  %v560_v52 = vpop.f32.mrf.mxu1  ;;  %v410_v54 = vadd.f32 %v558_v50, %v361_v47 }
  0xeb   :  { %v534_v53 = vpop.f32.mrf.mxu0  ;;  %v561_v56 = vadd.f32 %v560_v52, %v559_v48 }
  0xec   :  { %v364_v55 = vadd.f32 %v533_v51, %v452_v42  ;;  %v562_v57 = vpop.f32.mrf.mxu1  ;;  %v424_v63 = vmax.f32 %v410_v54, 0.0 }
  0xed   :  { %v535_v58 = vpop.f32.mrf.mxu0 }
  0xee   :  { %v413_v59 = vadd.f32 %v561_v56, %v364_v55  ;;  %v536_v60 = vadd.f32 %v535_v58, %v534_v53  ;;  %v563_v61 = vpop.f32.mrf.mxu1 }
  0xef   :  { %v537_v62 = vpop.f32.mrf.mxu0  ;;  %v564_v5 = vadd.f32 %v563_v61, %v562_v57 }
  0xf0   :  { %v425_v0 = vmax.f32 %v413_v59, 0.0  ;;  %v369_v1 = vadd.f32 %v536_v60, %v452_v42  ;;  %v565_v2 = vpop.f32.mrf.mxu1 }
  0xf1   :  { %v538_v3 = vpop.f32.mrf.mxu0 }
  0xf2   :  { %v504_v4 = vpack.c.bf16 %v425_v0, %v424_v63  ;;  %v539_v6 = vadd.f32 %v538_v3, %v537_v62  ;;  %v566_v7 = vpop.f32.mrf.mxu1  ;;  %v418_v8 = vadd.f32 %v564_v5, %v369_v1 }
  0xf3   :  { %v567_v10 = vadd.f32 %v566_v7, %v565_v2 }
  0xf4   :  { %505 = vst [vmem:[%s764_s3] sm:$0xff] %v504_v4   ;;  %v372_v9 = vadd.f32 %v539_v6, %v452_v42  ;;  %v426_v12 = vmax.f32 %v418_v8, 0.0 }
  0xf6   :  { %v421_v11 = vadd.f32 %v567_v10, %v372_v9 }
  0xf8   :  { %v427_v13 = vmax.f32 %v421_v11, 0.0 }
  0xfa   :  { %v509_v14 = vpack.c.bf16 %v427_v13, %v426_v12 }
  0xfc   :  { %511 = vst [vmem:[%s764_s3 + $0x8] sm:$0xff] %v509_v14  }

// kernel: nature_cnn_forward.6
= control target key start
LH: loop header
LB: loop body
LE: loop exit
PB: predicated region body
PF: predicated region fallthrough
CT: control target
= control target key end

     0   :  { %v690_v33 = vmov 0.0   ;;  %vm691_vm0 = vmmov 0   ;;  %s853_s1 = inlined_call_operand.vmem [shape: bf16[640,128], index: 1, kind: input, shape index: {}]   ;;  %s854_s0 = inlined_call_operand.vmem [shape: bf16[16,640], index: 0, kind: input, shape index: {}]   ;;  %s855_s2 = inlined_call_operand.vmem [shape: f32[1,128], index: 2, kind: input, shape index: {}]   ;;  %s856_s3 = inlined_call_operand.vmem [shape: bf16[16,128], index: 3, kind: output, shape index: {}]  }
   0x1   :  { %v643_v0 = vld [vmem:[%s853_s1 + $0x78] sm:$0xff]   ;;  %v647_v4 = vld [vmem:[%s853_s1 + $0x70] sm:$0xff]   ;;  %v651_v8 = vld [vmem:[%s853_s1 + $0x68] sm:$0xff]  }
   0x2   :  { %v644_v1 = vld [vmem:[%s853_s1 + $0x38] sm:$0xff]   ;;  %568 = vmatprep.subr.bf16.mxu0 %v643_v0  ;;  %v648_v5 = vld [vmem:[%s853_s1 + $0x30] sm:$0xff]   ;;  %v652_v9 = vld [vmem:[%s853_s1 + $0x28] sm:$0xff]  }
   0x3   :  { %v645_v2 = vld [vmem:[%s853_s1 + $0xf8] sm:$0xff]   ;;  %569 = vmatpush3.bf16.msra.mxu0 %v644_v1  ;;  %v649_v6 = vld [vmem:[%s853_s1 + $0xf0] sm:$0xff]   ;;  %v653_v10 = vld [vmem:[%s853_s1 + $0xe8] sm:$0xff]  }
   0x4   :  { %v646_v3 = vld [vmem:[%s853_s1 + $0xb8] sm:$0xff]   ;;  %590 = vmatprep.subr.bf16.mxu1 %v645_v2  ;;  %570 = vmatprep.subr.bf16.mxu0 %v647_v4  ;;  %v650_v7 = vld [vmem:[%s853_s1 + $0xb0] sm:$0xff]   ;;  %v654_v11 = vld [vmem:[%s853_s1 + $0xa8] sm:$0xff]  }
   0x5   :  { %591 = vmatpush3.bf16.msra.mxu1 %v646_v3  ;;  %v655_v12 = vld [vmem:[%s853_s1 + $0x60] sm:$0xff]   ;;  %v659_v16 = vld [vmem:[%s853_s1 + $0x58] sm:$0xff]   ;;  %v663_v20 = vld [vmem:[%s853_s1 + $0x50] sm:$0xff]  }
   0x6   :  { %592 = vmatprep.subr.bf16.mxu1 %v649_v6  ;;  %v656_v13 = vld [vmem:[%s853_s1 + $0x20] sm:$0xff]   ;;  %v660_v17 = vld [vmem:[%s853_s1 + $0x18] sm:$0xff]   ;;  %v664_v21 = vld [vmem:[%s853_s1 + $0x10] sm:$0xff]  }
   0x7   :  { %571 = vmatpush3.bf16.msra.mxu0 %v648_v5  ;;  %v657_v14 = vld [vmem:[%s853_s1 + $0xe0] sm:$0xff]   ;;  %v661_v18 = vld [vmem:[%s853_s1 + $0xd8] sm:$0xff]   ;;  %v665_v22 = vld [vmem:[%s853_s1 + $0xd0] sm:$0xff]  }
   0x8   :  { %572 = vmatprep.subr.bf16.mxu0 %v651_v8  ;;  %v658_v15 = vld [vmem:[%s853_s1 + $0xa0] sm:$0xff]   ;;  %v662_v19 = vld [vmem:[%s853_s1 + $0x98] sm:$0xff]   ;;  %v666_v23 = vld [vmem:[%s853_s1 + $0x90] sm:$0xff]  }
   0x9   :  { %593 = vmatpush3.bf16.msra.mxu1 %v650_v7  ;;  %v667_v24 = vld [vmem:[%s853_s1 + $0x48] sm:$0xff]   ;;  %v671_v28 = vld [vmem:[%s853_s1 + $0x40] sm:$0xff]   ;;  %v681_v37 = vld [vmem:[%s853_s1 + $0x138] sm:$0xff]  }
   0xa   :  { %594 = vmatprep.subr.bf16.mxu1 %v653_v10  ;;  %v668_v25 = vld [vmem:[%s853_s1 + $0x8] sm:$0xff]   ;;  %v672_v29 = vld [vmem:[%s853_s1] sm:$0xff]   ;;  %v682_v38 = vld [vmem:[%s853_s1 + $0x130] sm:$0xff]  }
   0xb   :  { %573 = vmatpush3.bf16.msra.mxu0 %v652_v9  ;;  %v669_v26 = vld [vmem:[%s853_s1 + $0xc8] sm:$0xff]   ;;  %v673_v30 = vld [vmem:[%s853_s1 + $0xc0] sm:$0xff]   ;;  %v685_v41 = vld [vmem:[%s853_s1 + $0x118] sm:$0xff]  }
   0xc   :  { %574 = vmatprep.subr.bf16.mxu0 %v655_v12  ;;  %v670_v27 = vld [vmem:[%s853_s1 + $0x88] sm:$0xff]   ;;  %v674_v31 = vld [vmem:[%s854_s0] ss:$20 sps:$4 sm:$0xff]   ;;  %v676_v32 = vld [vmem:[%s854_s0 + $0x4] ss:$20 sps:$4 sm:$0xff]  }
   0xd   :  { %595 = vmatpush3.bf16.msra.mxu1 %v654_v11  ;;  %v677_v34 = vld [vmem:[%s853_s1 + $0x80] sm:$0xff]   ;;  %406 = vmatprep.mubr.bf16.mxu0 %v676_v32  ;;  %v678_v35 = vld [vmem:[%s854_s0 + $0x8] ss:$20 sps:$4 sm:$0xff]   ;;  %v686_v42 = vld [vmem:[%s853_s1 + $0x110] sm:$0xff]  }
   0xe   :  { %596 = vmatprep.subr.bf16.mxu1 %v657_v14  ;;  %v680_v36 = vld [vmem:[%s854_s0 + $0xc] ss:$20 sps:$4 sm:$0xff]   ;;  %v689_v45 = vld [vmem:[%s854_s0 + $0x10] ss:$20 sps:$4 sm:$0xff]  }
   0xf   :  { %575 = vmatpush3.bf16.msra.mxu0 %v656_v13  ;;  %447 = vmatprep.mubr.bf16.mxu1 %v680_v36  ;;  %v683_v39 = vld [vmem:[%s853_s1 + $0x128] sm:$0xff]   ;;  %v684_v40 = vld [vmem:[%s853_s1 + $0x120] sm:$0xff]  }
  0x10   :  { %576 = vmatprep.subr.bf16.mxu0 %v659_v16  ;;  %v687_v43 = vld [vmem:[%s853_s1 + $0x108] sm:$0xff]   ;;  %v688_v44 = vld [vmem:[%s853_s1 + $0x100] sm:$0xff]  }
  0x11   :  { %597 = vmatpush3.bf16.msra.mxu1 %v658_v15  ;;  %v513_v54 = vld [vmem:[%s855_s2] ss:$0 sm:$0xff] }
  0x12   :  { %598 = vmatprep.subr.bf16.mxu1 %v661_v18 }
  0x13   :  { %577 = vmatpush3.bf16.msra.mxu0 %v660_v17 }
  0x14   :  { %578 = vmatprep.subr.bf16.mxu0 %v663_v20 }
  0x15   :  { %599 = vmatpush3.bf16.msra.mxu1 %v662_v19 }
  0x16   :  { %600 = vmatprep.subr.bf16.mxu1 %v665_v22 }
  0x17   :  { %579 = vmatpush3.bf16.msra.mxu0 %v664_v21 }
  0x18   :  { %580 = vmatprep.subr.bf16.mxu0 %v667_v24 }
  0x19   :  { %601 = vmatpush3.bf16.msra.mxu1 %v666_v23 }
  0x1a   :  { %602 = vmatprep.subr.bf16.mxu1 %v669_v26 }
  0x1b   :  { %581 = vmatpush3.bf16.msra.mxu0 %v668_v25 }
  0x1c   :  { %582 = vmatprep.subr.bf16.mxu0 %v671_v28 }
  0x1d   :  { %603 = vmatpush3.bf16.msra.mxu1 %v670_v27 }
  0x1e   :  { %604 = vmatprep.subr.bf16.mxu1 %v673_v30 }
  0x1f   :  { %583 = vmatpush3.bf16.msra.mxu0 %v672_v29 }
  0x20   :  { %621 = vmatprep.subr.bf16.mxu0 %v690_v33 }
  0x21   :  { %605 = vmatpush3.bf16.msra.mxu1 %v677_v34 }
  0x22   :  { %407 = vmatmul.mubr.bf16.vlgmr.msra.gmra.mxu0 %v674_v31 }
  0x23   :  { %637 = vmatprep.mubr.msk.bf16.mxu0 %vm691_vm0, %v690_v33  ;;  %622 = vmatpush3.bf16.msra.mxu0 %v681_v37 }
  0x24   :  { %448 = vmatmul.mubr.bf16.vlgmr.msra.gmra.mxu1 %v678_v35  ;;  %623 = vmatprep.subr.bf16.mxu0 %v690_v33 }
  0x27   :  { %624 = vmatpush3.bf16.msra.mxu0 %v682_v38 }
  0x28   :  { %625 = vmatprep.subr.bf16.mxu0 %v690_v33 }
  0x2b   :  { %626 = vmatpush3.bf16.msra.mxu0 %v683_v39 }
  0x2c   :  { %627 = vmatprep.subr.bf16.mxu0 %v690_v33 }
  0x2f   :  { %628 = vmatpush3.bf16.msra.mxu0 %v684_v40 }
  0x30   :  { %629 = vmatprep.subr.bf16.mxu0 %v690_v33 }
  0x33   :  { %630 = vmatpush3.bf16.msra.mxu0 %v685_v41 }
  0x34   :  { %631 = vmatprep.subr.bf16.mxu0 %v690_v33 }
  0x37   :  { %632 = vmatpush3.bf16.msra.mxu0 %v686_v42 }
  0x38   :  { %633 = vmatprep.subr.bf16.mxu0 %v690_v33 }
  0x3b   :  { %634 = vmatpush3.bf16.msra.mxu0 %v687_v43 }
  0x3c   :  { %635 = vmatprep.subr.bf16.mxu0 %v690_v33 }
  0x3f   :  { %636 = vmatpush3.bf16.msra.mxu0 %v688_v44 }
  0x42   :  { %638 = vmatmul.mubr.bf16.vlgmr.msra.gmra.mxu0 %v689_v45 }
  0xe2   :  { %v584_v46 = vpop.f32.mrf.mxu0 }
  0xe4   :  { %v585_v47 = vpop.f32.mrf.mxu0  ;;  %v606_v48 = vpop.f32.mrf.mxu1 }
  0xe5   :  { %v586_v53 = vadd.f32 %v585_v47, %v584_v46 }
  0xe6   :  { %v587_v49 = vpop.f32.mrf.mxu0  ;;  %v607_v50 = vpop.f32.mrf.mxu1 }
  0xe7   :  { %v409_v57 = vadd.f32 %v586_v53, %v513_v54  ;;  %v608_v58 = vadd.f32 %v607_v50, %v606_v48 }
  0xe8   :  { %v588_v51 = vpop.f32.mrf.mxu0  ;;  %v609_v52 = vpop.f32.mrf.mxu1 }
  0xe9   :  { %v589_v55 = vadd.f32 %v588_v51, %v587_v49  ;;  %v450_v62 = vadd.f32 %v608_v58, %v409_v57 }
  0xea   :  { %v610_v56 = vpop.f32.mrf.mxu1 }
  0xeb   :  { %v412_v59 = vadd.f32 %v589_v55, %v513_v54  ;;  %v611_v60 = vadd.f32 %v610_v56, %v609_v52 }
  0xed   :  { %v453_v1 = vadd.f32 %v611_v60, %v412_v59 }
 0x102   :  { %v490_v61 = vpop.f32.mrf.mxu0 }
 0x103   :  { %v491_v0 = vadd.f32 %v490_v61, %v450_v62 }
 0x104   :  { %v639_v63 = vpop.f32.mrf.mxu0 }
 0x105   :  { %v497_v5 = vmax.f32 %v491_v0, 0.0 }
 0x106   :  { %v493_v2 = vpop.f32.mrf.mxu0 }
 0x107   :  { %v494_v3 = vadd.f32 %v493_v2, %v453_v1 }
 0x108   :  { %v640_v4 = vpop.f32.mrf.mxu0 }
 0x109   :  { %v498_v6 = vmax.f32 %v494_v3, 0.0 }
 0x10b   :  { %v566_v7 = vpack.c.bf16 %v498_v6, %v497_v5 }
 0x10d   :  { %567 = vst [vmem:[%s856_s3] sm:$0xff] %v566_v7  }

// kernel: nature_cnn_forward.7
= control target key start
LH: loop header
LB: loop body
LE: loop exit
PB: predicated region body
PF: predicated region fallthrough
CT: control target
= control target key end

     0   :  { %v884_v1 = vmov 0   ;;  %s1122_s1 = inlined_call_operand.vmem [shape: bf16[128,512], index: 1, kind: input, shape index: {}]   ;;  %s1123_s0 = inlined_call_operand.vmem [shape: bf16[16,128], index: 0, kind: input, shape index: {}]   ;;  %s1124_s3 = inlined_call_operand.vmem [shape: bf16[512,128], index: 3, kind: input, shape index: {}]   ;;  %s1125_s2 = inlined_call_operand.vmem [shape: f32[1,512], index: 2, kind: input, shape index: {}]   ;;  %s1126_s4 = inlined_call_operand.vmem [shape: f32[1,128], index: 4, kind: input, shape index: {}]   ;;  %s1127_s5 = inlined_call_operand.vmem [shape: f32[16,128], index: 5, kind: output, shape index: {}]  }
   0x1   :  { %v803_v0 = vld [vmem:[%s1122_s1 + $0xe4] ss:$16 sps:$4 sm:$0xff]   ;;  %275 = vmatprep.mubr.bf16.mxu0 %v884_v1  ;;  %318 = vmatprep.mubr.bf16.mxu1 %v884_v1  ;;  %v805_v2 = vld [vmem:[%s1122_s1 + $0xec] ss:$16 sps:$4 sm:$0xff]   ;;  %v807_v3 = vld [vmem:[%s1122_s1 + $0xe0] ss:$16 sps:$4 sm:$0xff]  }
   0x2   :  { %243 = vmatprep.subr.bf16.mxu0 %v803_v0  ;;  %v808_v4 = vld [vmem:[%s1122_s1 + $0xe8] ss:$16 sps:$4 sm:$0xff]   ;;  %286 = vmatprep.subr.bf16.mxu1 %v805_v2  ;;  %v809_v5 = vld [vmem:[%s1122_s1 + $0xc4] ss:$16 sps:$4 sm:$0xff]   ;;  %v811_v6 = vld [vmem:[%s1122_s1 + $0xcc] ss:$16 sps:$4 sm:$0xff]   ;;  %v57_v2 = vlaneseq }
   0x3   :  { %244 = vmatpush1.bf16.msra.mxu0 %v807_v3  ;;  %287 = vmatpush1.bf16.msra.mxu1 %v808_v4  ;;  %v813_v7 = vld [vmem:[%s1122_s1 + $0xc0] ss:$16 sps:$4 sm:$0xff]   ;;  %v814_v8 = vld [vmem:[%s1122_s1 + $0xc8] ss:$16 sps:$4 sm:$0xff]   ;;  %v815_v9 = vld [vmem:[%s1122_s1 + $0xa4] ss:$16 sps:$4 sm:$0xff]  }
   0x4   :  { %245 = vmatprep.subr.bf16.mxu0 %v809_v5  ;;  %288 = vmatprep.subr.bf16.mxu1 %v811_v6  ;;  %v817_v10 = vld [vmem:[%s1122_s1 + $0xac] ss:$16 sps:$4 sm:$0xff]   ;;  %v819_v11 = vld [vmem:[%s1122_s1 + $0xa0] ss:$16 sps:$4 sm:$0xff]   ;;  %v820_v12 = vld [vmem:[%s1122_s1 + $0xa8] ss:$16 sps:$4 sm:$0xff]  }
   0x5   :  { %v821_v13 = vld [vmem:[%s1122_s1 + $0x84] ss:$16 sps:$4 sm:$0xff]   ;;  %v823_v14 = vld [vmem:[%s1122_s1 + $0x8c] ss:$16 sps:$4 sm:$0xff]   ;;  %v825_v15 = vld [vmem:[%s1122_s1 + $0x80] ss:$16 sps:$4 sm:$0xff]  }
   0x6   :  { %v826_v16 = vld [vmem:[%s1122_s1 + $0x88] ss:$16 sps:$4 sm:$0xff]   ;;  %v827_v17 = vld [vmem:[%s1122_s1 + $0x64] ss:$16 sps:$4 sm:$0xff]   ;;  %v829_v18 = vld [vmem:[%s1122_s1 + $0x6c] ss:$16 sps:$4 sm:$0xff]  }
   0x7   :  { %246 = vmatpush1.bf16.msra.mxu0 %v813_v7  ;;  %289 = vmatpush1.bf16.msra.mxu1 %v814_v8  ;;  %v831_v19 = vld [vmem:[%s1122_s1 + $0x60] ss:$16 sps:$4 sm:$0xff]   ;;  %v832_v20 = vld [vmem:[%s1122_s1 + $0x68] ss:$16 sps:$4 sm:$0xff]   ;;  %v833_v21 = vld [vmem:[%s1122_s1 + $0x44] ss:$16 sps:$4 sm:$0xff]  }
   0x8   :  { %247 = vmatprep.subr.bf16.mxu0 %v815_v9  ;;  %290 = vmatprep.subr.bf16.mxu1 %v817_v10  ;;  %v835_v22 = vld [vmem:[%s1122_s1 + $0x4c] ss:$16 sps:$4 sm:$0xff]   ;;  %v837_v23 = vld [vmem:[%s1122_s1 + $0x40] ss:$16 sps:$4 sm:$0xff]   ;;  %v838_v24 = vld [vmem:[%s1122_s1 + $0x48] ss:$16 sps:$4 sm:$0xff]  }
   0x9   :  { %v839_v25 = vld [vmem:[%s1122_s1 + $0x24] ss:$16 sps:$4 sm:$0xff]   ;;  %v841_v26 = vld [vmem:[%s1122_s1 + $0x2c] ss:$16 sps:$4 sm:$0xff]   ;;  %v843_v27 = vld [vmem:[%s1122_s1 + $0x20] ss:$16 sps:$4 sm:$0xff]  }
   0xa   :  { %v844_v28 = vld [vmem:[%s1122_s1 + $0x28] ss:$16 sps:$4 sm:$0xff]   ;;  %v845_v29 = vld [vmem:[%s1122_s1 + $0x4] ss:$16 sps:$4 sm:$0xff]   ;;  %v847_v30 = vld [vmem:[%s1122_s1 + $0xc] ss:$16 sps:$4 sm:$0xff]  }
   0xb   :  { %248 = vmatpush1.bf16.msra.mxu0 %v819_v11  ;;  %291 = vmatpush1.bf16.msra.mxu1 %v820_v12  ;;  %v849_v31 = vld [vmem:[%s1122_s1] ss:$16 sps:$4 sm:$0xff]   ;;  %v850_v32 = vld [vmem:[%s1122_s1 + $0x8] ss:$16 sps:$4 sm:$0xff]   ;;  %v58_v3 = vshrl.u32 %v57_v2, 7 }
   0xc   :  { %249 = vmatprep.subr.bf16.mxu0 %v821_v13  ;;  %292 = vmatprep.subr.bf16.mxu1 %v823_v14  ;;  %v852_v33 = vld [vmem:[%s1124_s3 + $0x78] sm:$0xff]   ;;  %v851_v34 = vld [vmem:[%s1123_s0] sm:$0xff]   ;;  %v856_v38 = vld [vmem:[%s1124_s3 + $0x70] sm:$0xff]  }
   0xd   :  { %v853_v35 = vld [vmem:[%s1124_s3 + $0xf8] sm:$0xff]   ;;  %v857_v39 = vld [vmem:[%s1124_s3 + $0xf0] sm:$0xff]   ;;  %v860_v42 = vld [vmem:[%s1124_s3 + $0x68] sm:$0xff]   ;;  %v63_v4 = vsub.s32 1, %v58_v3  ;;  %v71_v5 = vsub.s32 3, %v58_v3  ;;  %v59_v6 = vsub.s32 0, %v58_v3 }
   0xe   :  { %v854_v36 = vld [vmem:[%s1124_s3 + $0x38] sm:$0xff]   ;;  %v858_v40 = vld [vmem:[%s1124_s3 + $0x30] sm:$0xff]   ;;  %v861_v43 = vld [vmem:[%s1124_s3 + $0xe8] sm:$0xff]   ;;  %v67_v7 = vsub.s32 2, %v58_v3 }
   0xf   :  { %250 = vmatpush1.bf16.msra.mxu0 %v825_v15  ;;  %293 = vmatpush1.bf16.msra.mxu1 %v826_v16  ;;  %v855_v37 = vld [vmem:[%s1124_s3 + $0xb8] sm:$0xff]   ;;  %v859_v41 = vld [vmem:[%s1124_s3 + $0xb0] sm:$0xff]   ;;  %v862_v44 = vld [vmem:[%s1124_s3 + $0x28] sm:$0xff]  }
  0x10   :  { %251 = vmatprep.subr.bf16.mxu0 %v827_v17  ;;  %294 = vmatprep.subr.bf16.mxu1 %v829_v18  ;;  %v863_v45 = vld [vmem:[%s1124_s3 + $0xa8] sm:$0xff]   ;;  %v864_v46 = vld [vmem:[%s1124_s3 + $0x60] sm:$0xff]   ;;  %v868_v50 = vld [vmem:[%s1124_s3 + $0x58] sm:$0xff]  }
  0x11   :  { %v865_v47 = vld [vmem:[%s1124_s3 + $0xe0] sm:$0xff]   ;;  %v869_v51 = vld [vmem:[%s1124_s3 + $0xd8] sm:$0xff]   ;;  %v872_v54 = vld [vmem:[%s1124_s3 + $0x50] sm:$0xff]  }
  0x12   :  { %v866_v48 = vld [vmem:[%s1124_s3 + $0x20] sm:$0xff]   ;;  %v870_v52 = vld [vmem:[%s1124_s3 + $0x18] sm:$0xff]   ;;  %v873_v55 = vld [vmem:[%s1124_s3 + $0xd0] sm:$0xff]  }
  0x13   :  { %252 = vmatpush1.bf16.msra.mxu0 %v831_v19  ;;  %295 = vmatpush1.bf16.msra.mxu1 %v832_v20  ;;  %v867_v49 = vld [vmem:[%s1124_s3 + $0xa0] sm:$0xff]   ;;  %v871_v53 = vld [vmem:[%s1124_s3 + $0x98] sm:$0xff]   ;;  %v874_v56 = vld [vmem:[%s1124_s3 + $0x10] sm:$0xff]  }
  0x14   :  { %253 = vmatprep.subr.bf16.mxu0 %v833_v21  ;;  %296 = vmatprep.subr.bf16.mxu1 %v835_v22  ;;  %v875_v57 = vld [vmem:[%s1124_s3 + $0x90] sm:$0xff]   ;;  %v876_v58 = vld [vmem:[%s1124_s3 + $0x48] sm:$0xff]   ;;  %v880_v62 = vld [vmem:[%s1124_s3 + $0x40] sm:$0xff]  }
  0x15   :  { %v877_v59 = vld [vmem:[%s1124_s3 + $0xc8] sm:$0xff]   ;;  %v881_v63 = vld [vmem:[%s1124_s3 + $0xc0] sm:$0xff]  }
  0x16   :  { %v878_v60 = vld [vmem:[%s1124_s3 + $0x8] sm:$0xff]   ;;  %v882_v0 = vld [vmem:[%s1124_s3] sm:$0xff]  }
  0x17   :  { %254 = vmatpush1.bf16.msra.mxu0 %v837_v23  ;;  %297 = vmatpush1.bf16.msra.mxu1 %v838_v24  ;;  %v879_v61 = vld [vmem:[%s1124_s3 + $0x88] sm:$0xff]   ;;  %v883_v1 = vld [vmem:[%s1124_s3 + $0x80] sm:$0xff]  }
  0x18   :  { %255 = vmatprep.subr.bf16.mxu0 %v839_v25  ;;  %298 = vmatprep.subr.bf16.mxu1 %v841_v26  ;;  %v55_v8 = vld [vmem:[%s1125_s2] sm:$0xf] }
  0x19   :  { %v64_v11 = vrot.slane %v55_v8, %v63_v4  ;;  %v72_v12 = vrot.slane %v55_v8, %v71_v5  ;;  %v60_v13 = vrot.slane %v55_v8, %v59_v6  ;;  %v68_v14 = vrot.slane %v55_v8, %v67_v7 }
  0x1b   :  { %256 = vmatpush1.bf16.msra.mxu0 %v843_v27  ;;  %299 = vmatpush1.bf16.msra.mxu1 %v844_v28 }
  0x1c   :  { %257 = vmatprep.subr.bf16.mxu0 %v845_v29  ;;  %300 = vmatprep.subr.bf16.mxu1 %v847_v30 }
  0x1f   :  { %258 = vmatpush1.bf16.msra.mxu0 %v849_v31  ;;  %301 = vmatpush1.bf16.msra.mxu1 %v850_v32 }
  0x20   :  { %758 = vmatprep.subr.bf16.mxu0 %v852_v33  ;;  %780 = vmatprep.subr.bf16.mxu1 %v853_v35 }
  0x22   :  { %276 = vmatmul.mubr.bf16.vlgmr.msra.gmra.mxu0 %v851_v34  ;;  %319 = vmatmul.mubr.bf16.vlgmr.msra.gmra.mxu1 %v851_v34 }
  0x23   :  { %759 = vmatpush3.bf16.msra.mxu0 %v854_v36  ;;  %781 = vmatpush3.bf16.msra.mxu1 %v855_v37 }
  0x24   :  { %760 = vmatprep.subr.bf16.mxu0 %v856_v38  ;;  %782 = vmatprep.subr.bf16.mxu1 %v857_v39 }
  0x27   :  { %761 = vmatpush3.bf16.msra.mxu0 %v858_v40  ;;  %783 = vmatpush3.bf16.msra.mxu1 %v859_v41 }
  0x28   :  { %762 = vmatprep.subr.bf16.mxu0 %v860_v42  ;;  %784 = vmatprep.subr.bf16.mxu1 %v861_v43  ;;  %v725_v43 = vld [vmem:[%s1126_s4] ss:$0 sm:$0xff] }
  0x2b   :  { %763 = vmatpush3.bf16.msra.mxu0 %v862_v44  ;;  %785 = vmatpush3.bf16.msra.mxu1 %v863_v45 }
  0x2c   :  { %764 = vmatprep.subr.bf16.mxu0 %v864_v46  ;;  %786 = vmatprep.subr.bf16.mxu1 %v865_v47 }
  0x2f   :  { %765 = vmatpush3.bf16.msra.mxu0 %v866_v48  ;;  %787 = vmatpush3.bf16.msra.mxu1 %v867_v49 }
  0x30   :  { %766 = vmatprep.subr.bf16.mxu0 %v868_v50  ;;  %788 = vmatprep.subr.bf16.mxu1 %v869_v51 }
  0x33   :  { %767 = vmatpush3.bf16.msra.mxu0 %v870_v52  ;;  %789 = vmatpush3.bf16.msra.mxu1 %v871_v53 }
  0x34   :  { %768 = vmatprep.subr.bf16.mxu0 %v872_v54  ;;  %790 = vmatprep.subr.bf16.mxu1 %v873_v55 }
  0x37   :  { %769 = vmatpush3.bf16.msra.mxu0 %v874_v56  ;;  %791 = vmatpush3.bf16.msra.mxu1 %v875_v57 }
  0x38   :  { %770 = vmatprep.subr.bf16.mxu0 %v876_v58  ;;  %792 = vmatprep.subr.bf16.mxu1 %v877_v59 }
  0x3b   :  { %771 = vmatpush3.bf16.msra.mxu0 %v878_v60  ;;  %793 = vmatpush3.bf16.msra.mxu1 %v879_v61 }
  0x3c   :  { %772 = vmatprep.subr.bf16.mxu0 %v880_v62  ;;  %794 = vmatprep.subr.bf16.mxu1 %v881_v63 }
  0x3f   :  { %773 = vmatpush3.bf16.msra.mxu0 %v882_v0  ;;  %795 = vmatpush3.bf16.msra.mxu1 %v883_v1 }
  0xe2   :  { %v277_v9 = vpop.f32.mrf.mxu0  ;;  %v320_v10 = vpop.f32.mrf.mxu1 }
  0xe3   :  { %v278_v23 = vadd.f32 %v277_v9, %v60_v13  ;;  %v321_v24 = vadd.f32 %v320_v10, %v68_v14 }
  0xe4   :  { %v279_v15 = vpop.f32.mrf.mxu0  ;;  %v322_v16 = vpop.f32.mrf.mxu1 }
  0xe5   :  { %v280_v19 = vadd.f32 %v279_v15, %v64_v11  ;;  %v323_v20 = vadd.f32 %v322_v16, %v72_v12  ;;  %v329_v35 = vmax.f32 %v278_v23, 0.0  ;;  %v331_v36 = vmax.f32 %v321_v24, 0.0 }
  0xe6   :  { %v281_v17 = vpop.f32.mrf.mxu0  ;;  %v324_v18 = vpop.f32.mrf.mxu1 }
  0xe7   :  { %v282_v21 = vadd.f32 %v281_v17, %v60_v13  ;;  %v325_v22 = vadd.f32 %v324_v18, %v68_v14  ;;  %v330_v31 = vmax.f32 %v280_v19, 0.0  ;;  %v332_v32 = vmax.f32 %v323_v20, 0.0 }
  0xe8   :  { %v283_v25 = vpop.f32.mrf.mxu0  ;;  %v326_v26 = vpop.f32.mrf.mxu1 }
  0xe9   :  { %v284_v27 = vadd.f32 %v283_v25, %v64_v11  ;;  %v327_v28 = vadd.f32 %v326_v26, %v72_v12  ;;  %v333_v29 = vmax.f32 %v282_v21, 0.0  ;;  %v335_v30 = vmax.f32 %v325_v22, 0.0 }
  0xeb   :  { %v334_v33 = vmax.f32 %v284_v27, 0.0  ;;  %v336_v34 = vmax.f32 %v327_v28, 0.0  ;;  %v337_v39 = vpack.c.bf16 %v333_v29, %v329_v35  ;;  %v339_v40 = vpack.c.bf16 %v335_v30, %v331_v36 }
  0xed   :  { %v338_v37 = vpack.c.bf16 %v334_v33, %v330_v31  ;;  %v340_v38 = vpack.c.bf16 %v336_v34, %v332_v32 }
  0xef   :  { %636 = vmatprep.mubr.bf16.mxu0 %v338_v37  ;;  %677 = vmatprep.mubr.bf16.mxu1 %v340_v38 }
  0xf0   :  { %637 = vmatmul.mubr.bf16.vlgmr.msra.gmra.mxu0 %v337_v39  ;;  %678 = vmatmul.mubr.bf16.vlgmr.msra.gmra.mxu1 %v339_v40 }
 0x1b0   :  { %v774_v41 = vpop.f32.mrf.mxu0  ;;  %v796_v42 = vpop.f32.mrf.mxu1 }
 0x1b2   :  { %v775_v44 = vpop.f32.mrf.mxu0  ;;  %v797_v45 = vpop.f32.mrf.mxu1 }
 0x1b3   :  { %v776_v46 = vadd.f32 %v775_v44, %v774_v41  ;;  %v798_v50 = vadd.f32 %v797_v45, %v796_v42 }
 0x1b4   :  { %v777_v47 = vpop.f32.mrf.mxu0  ;;  %v799_v48 = vpop.f32.mrf.mxu1 }
 0x1b5   :  { %v639_v49 = vadd.f32 %v776_v46, %v725_v43 }
 0x1b6   :  { %v778_v51 = vpop.f32.mrf.mxu0  ;;  %v800_v52 = vpop.f32.mrf.mxu1 }
 0x1b7   :  { %v680_v53 = vadd.f32 %v798_v50, %v639_v49  ;;  %v779_v54 = vadd.f32 %v778_v51, %v777_v47  ;;  %v801_v56 = vadd.f32 %v800_v52, %v799_v48 }
 0x1b9   :  { %686 = vst [vmem:[%s1127_s5] sm:$0xff] %v680_v53  ;;  %v642_v55 = vadd.f32 %v779_v54, %v725_v43 }
 0x1bb   :  { %v683_v57 = vadd.f32 %v801_v56, %v642_v55 }
 0x1bd   :  { %687 = vst [vmem:[%s1127_s5 + $0x8] sm:$0xff] %v683_v57 }

</bundles_post_ra>
